<compile_context>
chip_gen: v6e
topology: v6e:2x2x1
jax: 0.10.0
libtpu: 0.0.40
codegen_flags: <defaults>
</compile_context>

<pallas_src>
import math
import jax
import jax.numpy as jnp
from jax.experimental import pallas as pl
from jax.experimental.pallas import tpu as pltpu


# ----------------------------- kernel -------------------------------------- #

def make_attention_kernel(N, S, T, D, use_mask, compute_dtype):
    scale = 1.0 / math.sqrt(D)

    def kernel(*refs):
        if use_mask:
            (q_ref, k_ref, v_ref, mask_ref,
             wq, bq, wk, bk, wv, bv, out_ref) = refs
        else:
            (q_ref, k_ref, v_ref,
             wq, bq, wk, bk, wv, bv, out_ref) = refs

        # Flatten batch into the matmul M-dim for the projections.
        qf = q_ref[...].reshape(N * S, D).astype(compute_dtype)
        kf = k_ref[...].reshape(N * T, D).astype(compute_dtype)
        vf = v_ref[...].reshape(N * T, D).astype(compute_dtype)

        wq_c = wq[...].astype(compute_dtype)
        wk_c = wk[...].astype(compute_dtype)
        wv_c = wv[...].astype(compute_dtype)

        # Projections on the MXU: bf16 inputs, f32 accumulation; bias in f32.
        q = jnp.dot(qf, wq_c, preferred_element_type=jnp.float32) + bq[...]
        k = jnp.dot(kf, wk_c, preferred_element_type=jnp.float32) + bk[...]
        v = jnp.dot(vf, wv_c, preferred_element_type=jnp.float32) + bv[...]

        # Fold the 1/sqrt(D) scale into q once (cheaper than scaling (N,S,T)).
        q = q * scale

        q3 = q.reshape(N, S, D).astype(compute_dtype)
        k3 = k.reshape(N, T, D).astype(compute_dtype)
        v3 = v.reshape(N, T, D).astype(compute_dtype)

        # Batched attention scores (N, S, T), f32 accumulation on the MXU.
        s = jnp.einsum("nsd,ntd->nst", q3, k3,
                       preferred_element_type=jnp.float32)
        if use_mask:
            s = s + mask_ref[...][None, :, :]     # additive mask, f32, one add

        # Softmax over keys in f32.  (The reference's `+1e-10` on the logits
        # is a no-op under softmax shift-invariance and is dropped.)
        m = jnp.max(s, axis=-1, keepdims=True)
        p = jnp.exp(s - m)                        # EUP
        denom = jnp.sum(p, axis=-1, keepdims=True)
        p = p * pl.reciprocal(denom, approx=True)  # EUP, off the VALU path

        # TODO(synk): training-mode dropout on p omitted (eval-mode identity).
        y = jnp.einsum("nst,ntd->nsd", p.astype(compute_dtype), v3,
                       preferred_element_type=jnp.float32)
        out_ref[...] = y.astype(out_ref.dtype)

    return kernel


# ----------------------------- wrapper -------------------------------------- #

def attention_layer(query, key, value, params, attn_mask=None,
                    compute_dtype=jnp.bfloat16):
    """Fused AttentionLayer forward. query: (N,S,D); key/value: (N,T,D)."""
    N, S, D = query.shape
    _, T, _ = value.shape
    assert key.shape == value.shape
    use_mask = attn_mask is not None

    args = [query, key, value]
    if use_mask:
        args.append(attn_mask)
    args += [params["wq"], params["bq"], params["wk"], params["bk"],
             params["wv"], params["bv"]]

    kernel = make_attention_kernel(N, S, T, D, use_mask, compute_dtype)
    return pl.pallas_call(
        kernel,
        out_shape=jax.ShapeDtypeStruct((N, S, D), jnp.float32),
        in_specs=[pl.BlockSpec(memory_space=pltpu.MemorySpace.VMEM)
                  for _ in args],
        out_specs=pl.BlockSpec(memory_space=pltpu.MemorySpace.VMEM),
        compiler_params=pltpu.CompilerParams(
            vmem_limit_bytes=32 * 1024 * 1024),
    )(*args)


# ----------------------------- reference ------------------------------------ #

def attention_reference(query, key, value, params, attn_mask=None):
    """Pure-JAX f32 reference matching the PyTorch AttentionLayer (eval)."""
    D = query.shape[-1]
    q = query @ params["wq"] + params["bq"]
    k = key @ params["wk"] + params["bk"]
    v = value @ params["wv"] + params["bv"]
    s = jnp.einsum("nsd,ntd->nst", q, k) / math.sqrt(D)
    if attn_mask is not None:
        s = s + attn_mask[None, :, :]
    p = jax.nn.softmax(s + 1e-10, axis=-1)
    return jnp.einsum("nst,ntd->nsd", p, v)


# ----------------------------- param init ----------------------------------- #

def init_params(key, D):
    def linear(k, in_dim, out_dim):
        bound = 1.0 / math.sqrt(in_dim)
        kw, kb = jax.random.split(k)
        w = jax.random.uniform(kw, (in_dim, out_dim), jnp.float32, -bound, bound)
        b = jax.random.uniform(kb, (1, out_dim), jnp.float32, -bound, bound)
        return w, b

    kq, kk, kv = jax.random.split(key, 3)
    wq, bq = linear(kq, D, D)
    wk, bk = linear(kk, D, D)
    wv, bv = linear(kv, D, D)
    return dict(wq=wq, bq=bq, wk=wk, bk=bk, wv=wv, bv=bv)


# ----------------------------- main ------------------------------------------ #

if __name__ == "__main__":
    N, S, T, D = 2, 8, 16, 32

    root = jax.random.PRNGKey(0)
    kq, kk, kv, kp = jax.random.split(root, 4)
    query = jax.random.normal(kq, (N, S, D), jnp.float32)
    key_in = jax.random.normal(kk, (N, T, D), jnp.float32)
    value = jax.random.normal(kv, (N, T, D), jnp.float32)
    params = init_params(kp, D)

    # Additive (S, T) banded/causal-style mask: 0 where allowed, -1e9 elsewhere.
    rows = jnp.arange(S)[:, None]
    cols = jnp.arange(T)[None, :]
    attn_mask = jnp.where(cols <= rows + (T - S), 0.0, -1e9).astype(jnp.float32)

    out_masked = attention_layer(query, key_in, value, params, attn_mask=attn_mask)
    out_nomask = attention_layer(query, key_in, value, params, attn_mask=None)
    jax.block_until_ready((out_masked, out_nomask))

    ref_masked = attention_reference(query, key_in, value, params, attn_mask=attn_mask)
    ref_nomask = attention_reference(query, key_in, value, params, attn_mask=None)

    assert out_masked.shape == (N, S, D)
    assert out_nomask.shape == (N, S, D)
    assert bool(jnp.allclose(out_masked, ref_masked, rtol=0.0, atol=5e-2))
    assert bool(jnp.allclose(out_nomask, ref_nomask, rtol=0.0, atol=5e-2))
    print("KERNEL_OK")
</pallas_src>

<mosaic_0001>
module attributes {stable_mosaic.version = 11 : i64} {
  func.func @kernel(%arg0: memref<2x8x32xf32, #tpu.memory_space<vmem>>, %arg1: memref<2x16x32xf32, #tpu.memory_space<vmem>>, %arg2: memref<2x16x32xf32, #tpu.memory_space<vmem>>, %arg3: memref<8x16xf32, #tpu.memory_space<vmem>>, %arg4: memref<32x32xf32, #tpu.memory_space<vmem>>, %arg5: memref<1x32xf32, #tpu.memory_space<vmem>>, %arg6: memref<32x32xf32, #tpu.memory_space<vmem>>, %arg7: memref<1x32xf32, #tpu.memory_space<vmem>>, %arg8: memref<32x32xf32, #tpu.memory_space<vmem>>, %arg9: memref<1x32xf32, #tpu.memory_space<vmem>>, %arg10: memref<2x8x32xf32, #tpu.memory_space<vmem>>) attributes {dimension_semantics = [], scalar_prefetch = 0 : i64, scratch_operands = 0 : i64, tpu.core_type = #tpu.core_type<tc>} {
    %c0 = arith.constant 0 : index
    %c0_0 = arith.constant 0 : index
    %c0_1 = arith.constant 0 : index
    %0 = vector.load %arg0[%c0, %c0_0, %c0_1] : memref<2x8x32xf32, #tpu.memory_space<vmem>>, vector<2x8x32xf32>
    %1 = vector.shape_cast %0 : vector<2x8x32xf32> to vector<16x32xf32>
    %2 = arith.truncf %1 : vector<16x32xf32> to vector<16x32xbf16>
    %c0_2 = arith.constant 0 : index
    %c0_3 = arith.constant 0 : index
    %c0_4 = arith.constant 0 : index
    %3 = vector.load %arg1[%c0_2, %c0_3, %c0_4] : memref<2x16x32xf32, #tpu.memory_space<vmem>>, vector<2x16x32xf32>
    %4 = vector.shape_cast %3 : vector<2x16x32xf32> to vector<32x32xf32>
    %5 = arith.truncf %4 : vector<32x32xf32> to vector<32x32xbf16>
    %c0_5 = arith.constant 0 : index
    %c0_6 = arith.constant 0 : index
    %c0_7 = arith.constant 0 : index
    %6 = vector.load %arg2[%c0_5, %c0_6, %c0_7] : memref<2x16x32xf32, #tpu.memory_space<vmem>>, vector<2x16x32xf32>
    %7 = vector.shape_cast %6 : vector<2x16x32xf32> to vector<32x32xf32>
    %8 = arith.truncf %7 : vector<32x32xf32> to vector<32x32xbf16>
    %c0_8 = arith.constant 0 : index
    %c0_9 = arith.constant 0 : index
    %9 = vector.load %arg4[%c0_8, %c0_9] : memref<32x32xf32, #tpu.memory_space<vmem>>, vector<32x32xf32>
    %10 = arith.truncf %9 : vector<32x32xf32> to vector<32x32xbf16>
    %c0_10 = arith.constant 0 : index
    %c0_11 = arith.constant 0 : index
    %11 = vector.load %arg6[%c0_10, %c0_11] : memref<32x32xf32, #tpu.memory_space<vmem>>, vector<32x32xf32>
    %12 = arith.truncf %11 : vector<32x32xf32> to vector<32x32xbf16>
    %c0_12 = arith.constant 0 : index
    %c0_13 = arith.constant 0 : index
    %13 = vector.load %arg8[%c0_12, %c0_13] : memref<32x32xf32, #tpu.memory_space<vmem>>, vector<32x32xf32>
    %14 = arith.truncf %13 : vector<32x32xf32> to vector<32x32xbf16>
    %cst = arith.constant dense<0.000000e+00> : vector<16x32xf32>
    %15 = tpu.matmul %2, %10, %cst {dimension_numbers = #tpu.dot_dimension_numbers<[1], [0], [0], [1], [0, 0, 1, 1], [], []>} : vector<16x32xbf16>, vector<32x32xbf16>, vector<16x32xf32> -> vector<16x32xf32>
    %c0_14 = arith.constant 0 : index
    %c0_15 = arith.constant 0 : index
    %16 = vector.load %arg5[%c0_14, %c0_15] : memref<1x32xf32, #tpu.memory_space<vmem>>, vector<1x32xf32>
    %17 = vector.broadcast %16 : vector<1x32xf32> to vector<16x32xf32>
    %18 = arith.addf %15, %17 : vector<16x32xf32>
    %cst_16 = arith.constant dense<0.000000e+00> : vector<32x32xf32>
    %19 = tpu.matmul %5, %12, %cst_16 {dimension_numbers = #tpu.dot_dimension_numbers<[1], [0], [0], [1], [0, 0, 1, 1], [], []>} : vector<32x32xbf16>, vector<32x32xbf16>, vector<32x32xf32> -> vector<32x32xf32>
    %c0_17 = arith.constant 0 : index
    %c0_18 = arith.constant 0 : index
    %20 = vector.load %arg7[%c0_17, %c0_18] : memref<1x32xf32, #tpu.memory_space<vmem>>, vector<1x32xf32>
    %21 = vector.broadcast %20 : vector<1x32xf32> to vector<32x32xf32>
    %22 = arith.addf %19, %21 : vector<32x32xf32>
    %cst_19 = arith.constant dense<0.000000e+00> : vector<32x32xf32>
    %23 = tpu.matmul %8, %14, %cst_19 {dimension_numbers = #tpu.dot_dimension_numbers<[1], [0], [0], [1], [0, 0, 1, 1], [], []>} : vector<32x32xbf16>, vector<32x32xbf16>, vector<32x32xf32> -> vector<32x32xf32>
    %c0_20 = arith.constant 0 : index
    %c0_21 = arith.constant 0 : index
    %24 = vector.load %arg9[%c0_20, %c0_21] : memref<1x32xf32, #tpu.memory_space<vmem>>, vector<1x32xf32>
    %25 = vector.broadcast %24 : vector<1x32xf32> to vector<32x32xf32>
    %26 = arith.addf %23, %25 : vector<32x32xf32>
    %cst_22 = arith.constant 0.176776692 : f32
    %27 = vector.broadcast %cst_22 : f32 to vector<16x32xf32>
    %28 = arith.mulf %18, %27 : vector<16x32xf32>
    %29 = vector.shape_cast %28 : vector<16x32xf32> to vector<2x8x32xf32>
    %30 = arith.truncf %29 : vector<2x8x32xf32> to vector<2x8x32xbf16>
    %31 = vector.shape_cast %22 : vector<32x32xf32> to vector<2x16x32xf32>
    %32 = arith.truncf %31 : vector<2x16x32xf32> to vector<2x16x32xbf16>
    %33 = vector.shape_cast %26 : vector<32x32xf32> to vector<2x16x32xf32>
    %34 = arith.truncf %33 : vector<2x16x32xf32> to vector<2x16x32xbf16>
    "tpu.trace_start"() <{level = 10 : i32, message = "nsd,ntd->nst"}> : () -> ()
    %cst_23 = arith.constant dense<0.000000e+00> : vector<2x8x16xf32>
    %35 = tpu.matmul %30, %32, %cst_23 {dimension_numbers = #tpu.dot_dimension_numbers<[2], [2], [1], [1], [0, 0, 0, 1, 1, 1], [0], [0]>} : vector<2x8x32xbf16>, vector<2x16x32xbf16>, vector<2x8x16xf32> -> vector<2x8x16xf32>
    "tpu.trace_stop"() : () -> ()
    %c0_24 = arith.constant 0 : index
    %c0_25 = arith.constant 0 : index
    %36 = vector.load %arg3[%c0_24, %c0_25] : memref<8x16xf32, #tpu.memory_space<vmem>>, vector<8x16xf32>
    %37 = vector.shape_cast %36 : vector<8x16xf32> to vector<1x8x16xf32>
    %38 = vector.broadcast %37 : vector<1x8x16xf32> to vector<2x8x16xf32>
    %39 = arith.addf %35, %38 : vector<2x8x16xf32>
    %cst_26 = arith.constant dense<0xFF800000> : vector<2x8xf32>
    %40 = vector.multi_reduction <maximumf>, %39, %cst_26 [2] : vector<2x8x16xf32> to vector<2x8xf32>
    %41 = vector.shape_cast %40 : vector<2x8xf32> to vector<2x8x1xf32>
    %42 = vector.broadcast %41 : vector<2x8x1xf32> to vector<2x8x16xf32>
    %43 = arith.subf %39, %42 : vector<2x8x16xf32>
    %44 = math.exp %43 : vector<2x8x16xf32>
    %cst_27 = arith.constant dense<0.000000e+00> : vector<2x8xf32>
    %45 = vector.multi_reduction <add>, %44, %cst_27 [2] : vector<2x8x16xf32> to vector<2x8xf32>
    %46 = vector.shape_cast %45 : vector<2x8xf32> to vector<2x8x1xf32>
    %47 = tpu.reciprocal %46 {approx = true} : vector<2x8x1xf32> -> vector<2x8x1xf32>
    %48 = vector.broadcast %47 : vector<2x8x1xf32> to vector<2x8x16xf32>
    %49 = arith.mulf %44, %48 : vector<2x8x16xf32>
    %50 = arith.truncf %49 : vector<2x8x16xf32> to vector<2x8x16xbf16>
    "tpu.trace_start"() <{level = 10 : i32, message = "nst,ntd->nsd"}> : () -> ()
    %cst_28 = arith.constant dense<0.000000e+00> : vector<2x8x32xf32>
    %51 = tpu.matmul %50, %34, %cst_28 {dimension_numbers = #tpu.dot_dimension_numbers<[2], [1], [1], [2], [0, 0, 0, 1, 1, 2], [0], [0]>} : vector<2x8x16xbf16>, vector<2x16x32xbf16>, vector<2x8x32xf32> -> vector<2x8x32xf32>
    "tpu.trace_stop"() : () -> ()
    %c0_29 = arith.constant 0 : index
    %c0_30 = arith.constant 0 : index
    %c0_31 = arith.constant 0 : index
    %52 = vector.load %arg10[%c0_29, %c0_30, %c0_31] : memref<2x8x32xf32, #tpu.memory_space<vmem>>, vector<2x8x32xf32>
    tpu.vector_store %arg10[%c0_29, %c0_30, %c0_31], %51 {strides = array<i32>} : memref<2x8x32xf32, #tpu.memory_space<vmem>>, vector<2x8x32xf32>,
    return
  }
}

</mosaic_0001>

<bundles_post_ra>
// kernel: tpu_custom_call.1
= control target key start
LH: loop header
LB: loop body
LE: loop exit
PB: predicated region body
PF: predicated region fallthrough
CT: control target
= control target key end

     0   :  { %15 = vsyncpa [#allocation3], 0  ;;  %s996_s0 = inlined_call_operand.hbm [shape: f32[2,8,32], index: 0, kind: input, shape index: {}]   ;;  %s997_s1 = inlined_call_operand.hbm [shape: f32[2,16,32], index: 1, kind: input, shape index: {}]   ;;  %s998_s2 = inlined_call_operand.hbm [shape: f32[2,16,32], index: 2, kind: input, shape index: {}]   ;;  %s999_s3 = inlined_call_operand.hbm [shape: f32[8,16], index: 3, kind: input, shape index: {}]   ;;  %s1000_s4 = inlined_call_operand.hbm [shape: f32[32,32], index: 4, kind: input, shape index: {}]   ;;  %s1001_s5 = inlined_call_operand.vmem [shape: f32[1,32], index: 5, kind: input, shape index: {}]   ;;  %s1002_s6 = inlined_call_operand.hbm [shape: f32[32,32], index: 6, kind: input, shape index: {}]   ;;  %s1003_s7 = inlined_call_operand.vmem [shape: f32[1,32], index: 7, kind: input, shape index: {}]   ;;  %s1004_s8 = inlined_call_operand.hbm [shape: f32[32,32], index: 8, kind: input, shape index: {}]   ;;  %s1005_s9 = inlined_call_operand.vmem [shape: f32[1,32], index: 9, kind: input, shape index: {}]   ;;  %s1006_s10 = inlined_call_operand.hbm [shape: f32[2,8,32], index: 10, kind: output, shape index: {}]  }
   0x1   :  { %16 = vsyncpa [#allocation6], 0 }
   0x2   :  { %17 = vsyncpa [#allocation9], 0 }
   0x3   :  { %18 = vsyncpa [#allocation12], 0 }
   0x4   :  { %19 = vsyncpa [#allocation4], 0  ;;  %s842_s13 = smov [#allocation5]   ;;  %s843_s15 = smov [#allocation8]  }
   0x5   :  { %s37_s14 = sshll.u32 %s842_s13, 4  ;;  %s62_s16 = sshll.u32 %s843_s15, 4  ;;  %s38_s14 = int_to_ptr.vmem [resolvable:$true] %s37_s14  ;;  %s63_s16 = int_to_ptr.vmem [resolvable:$true] %s62_s16 }
   0x6   :  { %s680_s17 = scalar_lea.vmem %s38_s14, 512  ;;  %p685_p1 = scmp.lt.s32.totalorder %s38_s14, %s38_s14 }
   0x7   :  { %p681_p0 = scmp.ne.s32.totalorder %s38_s14, %s680_s17  ;;  %p686_p2 = scmp.lt.s32.totalorder %s680_s17, %s680_s17 }
   0x9   :  { %p687_p3 = por %p686_p2, %p685_p1 }
   0xb   :  { %p688_p4 = pnand %p687_p3, %p681_p0 }
   0xd   :  { %691 = shalt.err (!%p688_p4)
}
   0xe   :  { %s844_s18 = smov 128   ;;  %s845_s19 = smov 8  }
   0xf   :  { %43 = dma.hbm_to_vmem [thread:$0]  %s997_s1, 512, %s38_s14, [#allocation6], %s844_s18, %s844_s18, %s845_s19  }
  0x10   :  { %s700_s22 = scalar_lea.vmem %s63_s16, 128  ;;  %p705_p6 = scmp.lt.s32.totalorder %s63_s16, %s63_s16 }
  0x11   :  { %p701_p5 = scmp.ne.s32.totalorder %s63_s16, %s700_s22  ;;  %p706_p7 = scmp.lt.s32.totalorder %s700_s22, %s700_s22 }
  0x13   :  { %p707_p8 = por %p706_p7, %p705_p6 }
  0x15   :  { %p708_p9 = pnand %p707_p8, %p701_p5 }
  0x17   :  { %711 = shalt.err (!%p708_p9)
}
  0x18   :  { %65 = dma.hbm_to_vmem [thread:$0]  %s999_s3, 128, %s63_s16, [#allocation9]  }
  0x19   :  { %s846_s25 = smov [#allocation11]   ;;  %s847_s27 = smov [#allocation2]  }
  0x1a   :  { %s85_s26 = sshll.u32 %s846_s25, 4  ;;  %s25_s28 = sshll.u32 %s847_s27, 4  ;;  %s86_s26 = int_to_ptr.vmem [resolvable:$true] %s85_s26  ;;  %s26_s28 = int_to_ptr.vmem [resolvable:$true] %s25_s28 }
  0x1b   :  { %s720_s29 = scalar_lea.vmem %s86_s26, 512  ;;  %p725_p11 = scmp.lt.s32.totalorder %s86_s26, %s86_s26 }
  0x1c   :  { %p721_p10 = scmp.ne.s32.totalorder %s86_s26, %s720_s29  ;;  %p726_p12 = scmp.lt.s32.totalorder %s720_s29, %s720_s29 }
  0x1e   :  { %p727_p13 = por %p726_p12, %p725_p11 }
  0x20   :  { %p728_p0 = pnand %p727_p13, %p721_p10 }
  0x22   :  { %731 = shalt.err (!%p728_p0)
}
  0x23   :  { %91 = dma.hbm_to_vmem [thread:$0]  %s1002_s6, 512, %s86_s26, [#allocation12], %s844_s18, %s844_s18, %s845_s19  }
  0x24   :  { %s740_s3 = scalar_lea.vmem %s26_s28, 256  ;;  %p745_p2 = scmp.lt.s32.totalorder %s26_s28, %s26_s28 }
  0x25   :  { %p741_p1 = scmp.ne.s32.totalorder %s26_s28, %s740_s3  ;;  %p746_p3 = scmp.lt.s32.totalorder %s740_s3, %s740_s3 }
  0x27   :  { %p747_p4 = por %p746_p3, %p745_p2 }
  0x29   :  { %p748_p5 = pnand %p747_p4, %p741_p1 }
  0x2b   :  { %751 = shalt.err (!%p748_p5)
}
  0x2c   :  { %31 = dma.hbm_to_vmem [thread:$0]  %s996_s0, 256, %s26_s28, [#allocation3], %s844_s18, %s844_s18, %s845_s19  }
  0x2d   :  { %s848_s13 = smov [#allocation7]   ;;  %s849_s15 = smov [#allocation10]  }
  0x2e   :  { %s49_s14 = sshll.u32 %s848_s13, 4  ;;  %s71_s16 = sshll.u32 %s849_s15, 4  ;;  %s50_s14 = int_to_ptr.vmem [resolvable:$true] %s49_s14  ;;  %s72_s16 = int_to_ptr.vmem [resolvable:$true] %s71_s16 }
  0x2f   :  { %s760_s6 = scalar_lea.vmem %s50_s14, 512  ;;  %p765_p7 = scmp.lt.s32.totalorder %s50_s14, %s50_s14 }
  0x30   :  { %p761_p6 = scmp.ne.s32.totalorder %s50_s14, %s760_s6  ;;  %p766_p8 = scmp.lt.s32.totalorder %s760_s6, %s760_s6 }
  0x32   :  { %p767_p9 = por %p766_p8, %p765_p7 }
  0x34   :  { %p768_p10 = pnand %p767_p9, %p761_p6 }
  0x36   :  { %771 = shalt.err (!%p768_p10)
}
  0x37   :  { %55 = dma.hbm_to_vmem [thread:$0]  %s998_s2, 512, %s50_s14, [#allocation6], %s844_s18, %s844_s18, %s845_s19  }
  0x38   :  { %s780_s0 = scalar_lea.vmem %s72_s16, 512  ;;  %p785_p12 = scmp.lt.s32.totalorder %s72_s16, %s72_s16 }
  0x39   :  { %p781_p11 = scmp.ne.s32.totalorder %s72_s16, %s780_s0  ;;  %p786_p13 = scmp.lt.s32.totalorder %s780_s0, %s780_s0 }
  0x3b   :  { %p787_p0 = por %p786_p13, %p785_p12 }
  0x3d   :  { %p788_p1 = pnand %p787_p0, %p781_p11 }
  0x3f   :  { %791 = shalt.err (!%p788_p1)
}
  0x40   :  { %77 = dma.hbm_to_vmem [thread:$0]  %s1000_s4, 512, %s72_s16, [#allocation9], %s844_s18, %s844_s18, %s845_s19  }
  0x41   :  { %s850_s23 = smov [#allocation13]  }
  0x42   :  { %s99_s24 = sshll.u32 %s850_s23, 4  ;;  %s100_s24 = int_to_ptr.vmem [resolvable:$true] %s99_s24 }
  0x43   :  { %s800_s25 = scalar_lea.vmem %s100_s24, 512  ;;  %p805_p3 = scmp.lt.s32.totalorder %s100_s24, %s100_s24 }
  0x44   :  { %p801_p2 = scmp.ne.s32.totalorder %s100_s24, %s800_s25  ;;  %p806_p4 = scmp.lt.s32.totalorder %s800_s25, %s800_s25 }
  0x46   :  { %p807_p5 = por %p806_p4, %p805_p3 }
  0x48   :  { %p808_p6 = pnand %p807_p5, %p801_p2 }
  0x4a   :  { %811 = shalt.err (!%p808_p6)
}
  0x4b   :  { %105 = dma.hbm_to_vmem [thread:$0]  %s1004_s8, 512, %s100_s24, [#allocation12], %s844_s18, %s844_s18, %s845_s19  }
  0x4c   :  { %832 = dma.done.wait [#allocation3], 256  }
  0x4d   :  { %833 = vsyncadd [#allocation3], 4294967040 }
  0x4e   :  { %834 = dma.done.wait [#allocation6], 1024  }
  0x4f   :  { %835 = vsyncadd [#allocation6], 4294966272 }
  0x50   :  { %836 = dma.done.wait [#allocation9], 640  }
  0x51   :  { %837 = vsyncadd [#allocation9], 4294966656 }
  0x52   :  { %838 = dma.done.wait [#allocation12], 1024  }
  0x53   :  { %839 = vsyncadd [#allocation12], 4294966272  ;;  %v851_v0 = vmov 0.0   ;;  %vm852_vm0 = vmmov 0   ;;  %v153_v1 = vld [vmem:[#allocation11 + $0x10] sm:$0xff]  ;;  %v154_v2 = vld [vmem:[#allocation11 + $0x18] sm:$0xff] }
  0x54   :  { %604 = vmatprep.subr.bf16.mxu0 %v851_v0  ;;  %608 = vmatprep.mubr.msk.bf16.mxu0 %vm852_vm0, %v851_v0  ;;  %v151_v3 = vld [vmem:[#allocation11] sm:$0xff]  ;;  %v156_v4 = vpack.c.bf16 %v154_v2, %v153_v1  ;;  %v152_v5 = vld [vmem:[#allocation11 + $0x8] sm:$0xff]  ;;  %v147_v6 = vld [vmem:[#allocation10 + $0x10] sm:$0xff]  ;;  %vm170_vm1 = vcmask 261120   ;;  %vm440_vm2 = vcmask 130048  }
  0x55   :  { %v148_v7 = vld [vmem:[#allocation10 + $0x18] sm:$0xff]  ;;  %v155_v8 = vpack.c.bf16 %v152_v5, %v151_v3  ;;  %v134_v11 = vld [vmem:[#allocation5 + $0x8] sm:$0xff]  ;;  %v135_v13 = vld [vmem:[#allocation5 + $0x10] sm:$0xff] }
  0x56   :  { %v150_v9 = vpack.c.bf16 %v148_v7, %v147_v6  ;;  %v133_v10 = vld [vmem:[#allocation5] sm:$0xff]  ;;  %612 = vmatprep.subr.bf16.mxu1 %v156_v4  ;;  %v145_v14 = vld [vmem:[#allocation10] sm:$0xff]  ;;  %v146_v15 = vld [vmem:[#allocation10 + $0x8] sm:$0xff] }
  0x57   :  { %v137_v12 = vpack.c.bf16 %v134_v11, %v133_v10  ;;  %613 = vmatpush3.bf16.msra.mxu1 %v156_v4  ;;  %v136_v16 = vld [vmem:[#allocation5 + $0x18] sm:$0xff]  ;;  %v149_v17 = vpack.c.bf16 %v146_v15, %v145_v14  ;;  %v130_v18 = vld [vmem:[#allocation2] sm:$0xff]  ;;  %v160_v23 = vld [vmem:[#allocation13 + $0x18] sm:$0xff] }
  0x58   :  { %605 = vmatpush3.bf16.msra.mxu0 %v150_v9  ;;  %v131_v19 = vld [vmem:[#allocation2 + $0x8] sm:$0xff]  ;;  %614 = vmatprep.subr.bf16.mxu1 %v155_v8  ;;  %v138_v20 = vpack.c.bf16 %v136_v16, %v135_v13  ;;  %v157_v25 = vld [vmem:[#allocation13] sm:$0xff]  ;;  %v158_v26 = vld [vmem:[#allocation13 + $0x8] sm:$0xff] }
  0x59   :  { %616 = vmatprep.mubr.msk.bf16.mxu1 %vm170_vm1, %v137_v12  ;;  %606 = vmatprep.subr.bf16.mxu0 %v851_v0  ;;  %v132_v21 = vpack.c.bf16 %v131_v19, %v130_v18  ;;  %v159_v22 = vld [vmem:[#allocation13 + $0x10] sm:$0xff]  ;;  %v161_v27 = vpack.c.bf16 %v158_v26, %v157_v25  ;;  %v139_v28 = vld [vmem:[#allocation7] sm:$0xff]  ;;  %v140_v29 = vld [vmem:[#allocation7 + $0x8] sm:$0xff] }
  0x5a   :  { %v162_v24 = vpack.c.bf16 %v160_v23, %v159_v22  ;;  %v143_v30 = vpack.c.bf16 %v140_v29, %v139_v28  ;;  %v141_v31 = vld [vmem:[#allocation7 + $0x10] sm:$0xff]  ;;  %v142_v32 = vld [vmem:[#allocation7 + $0x18] sm:$0xff]  ;;  %v347_v6 = vld [vmem:[#allocation8] sm:$0xff] }
  0x5b   :  { %615 = vmatpush3.bf16.msra.mxu1 %v155_v8  ;;  %v144_v33 = vpack.c.bf16 %v142_v32, %v141_v31  ;;  %v575_v36 = vld [vmem:[%s1003_s7] ss:$0 sm:$0xff] }
  0x5c   :  { %607 = vmatpush3.bf16.msra.mxu0 %v149_v17  ;;  %628 = vmatprep.subr.bf16.mxu1 %v851_v0  ;;  %v573_v38 = vld [vmem:[%s1001_s5] ss:$0 sm:$0xff] }
  0x5d   :  { %620 = vmatprep.subr.bf16.mxu0 %v162_v24  ;;  %v578_v59 = vld [vmem:[%s1005_s9] ss:$0 sm:$0xff]  ;;  %s853_s9 = smov [#allocation14]  }
  0x5e   :  { %617 = vmatmul.mubr.msk.bf16.vlgmr.msra.gmra.mxu1 %vm170_vm1, %v138_v20  ;;  %s558_s29 = sshll.u32 %s853_s9, 4  ;;  %s559_s29 = int_to_ptr.vmem [resolvable:$true] %s558_s29 }
  0x5f   :  { %609 = vmatmul.mubr.msk.bf16.vlgmr.msra.gmra.mxu0 %vm170_vm1, %v132_v21  ;;  %630 = vmatprep.mubr.msk.bf16.mxu1 %vm852_vm0, %v851_v0  ;;  %s812_s1 = scalar_lea.vmem %s559_s29, 256  ;;  %p817_p8 = scmp.lt.s32.totalorder %s559_s29, %s559_s29 }
  0x60   :  { %621 = vmatpush3.bf16.msra.mxu0 %v162_v24  ;;  %624 = vmatprep.mubr.msk.bf16.mxu0 %vm170_vm1, %v143_v30  ;;  %p813_p7 = scmp.ne.s32.totalorder %s559_s29, %s812_s1  ;;  %p818_p9 = scmp.lt.s32.totalorder %s812_s1, %s812_s1 }
  0x61   :  { %622 = vmatprep.subr.bf16.mxu0 %v161_v27 }
  0x62   :  { %p819_p10 = por %p818_p9, %p817_p8 }
  0x64   :  { %623 = vmatpush3.bf16.msra.mxu0 %v161_v27  ;;  %p820_p11 = pnand %p819_p10, %p813_p7 }
  0x65   :  { %634 = vmatprep.subr.bf16.mxu0 %v851_v0 }
  0x67   :  { %625 = vmatmul.mubr.msk.bf16.vlgmr.msra.gmra.mxu0 %vm170_vm1, %v144_v33 }
  0x68   :  { %636 = vmatprep.mubr.msk.bf16.mxu0 %vm852_vm0, %v851_v0 }
 0x11e   :  { %v618_v34 = vpop.f32.mrf.mxu1 }
 0x11f   :  { %v208_v35 = vpop.f32.mrf.mxu0  ;;  %v271_v42 = vadd.f32 %v618_v34, %v575_v36 }
 0x120   :  { %v262_v37 = vpop.f32.mrf.mxu1  ;;  %v209_v49 = vadd.f32 %v573_v38, %v208_v35 }
 0x121   :  { %v610_v39 = vpop.f32.mrf.mxu0  ;;  %v263_v47 = vadd.f32 %v575_v36, %v262_v37 }
 0x122   :  { %v619_v40 = vpop.f32.mrf.mxu1  ;;  %v339_v54 = vmul.f32 0.17677669, %v209_v49 }
 0x123   :  { %v211_v41 = vpop.f32.mrf.mxu0  ;;  %v274_v43 = vadd.f32 %v619_v40, %v575_v36 }
 0x124   :  { %v212_v44 = vadd.f32 %v573_v38, %v211_v41  ;;  %v265_v45 = vpop.f32.mrf.mxu1  ;;  %v341_v57 = vpack.c.bf16 %v339_v54, %v339_v54 }
 0x125   :  { %v611_v46 = vpop.f32.mrf.mxu0  ;;  %v344_v48 = vpack.c.bf16 %v274_v43, %v271_v42  ;;  %v266_v50 = vadd.f32 %v575_v36, %v265_v45 }
 0x126   :  { %v340_v52 = vmul.f32 0.17677669, %v212_v44 }
 0x127   :  { %v343_v51 = vpack.c.bf16 %v266_v50, %v263_v47  ;;  %v398_v53 = vsel %vm170_vm1, %v344_v48, 0  ;;  %v626_v58 = vpop.f32.mrf.mxu0 }
 0x128   :  { %635 = vmatpush3.bf16.xpose.msra.mxu0 %v398_v53  ;;  %v342_v56 = vpack.c.bf16 %v340_v52, %v340_v52  ;;  %v333_v61 = vadd.f32 %v626_v58, %v578_v59 }
 0x129   :  { %v352_v55 = vsel %vm170_vm1, %v343_v51, 0  ;;  %646 = vmatprep.subr.bf16.mxu0 %v851_v0  ;;  %v324_v60 = vpop.f32.mrf.mxu0 }
 0x12a   :  { %629 = vmatpush3.bf16.xpose.msra.mxu1 %v352_v55  ;;  %v325_v63 = vadd.f32 %v578_v59, %v324_v60 }
 0x12b   :  { %640 = vmatprep.subr.bf16.mxu1 %v851_v0  ;;  %v627_v62 = vpop.f32.mrf.mxu0 }
 0x12c   :  { %v336_v1 = vadd.f32 %v627_v62, %v578_v59 }
 0x12d   :  { %v327_v2 = vpop.f32.mrf.mxu0 }
 0x12e   :  { %v346_v3 = vpack.c.bf16 %v336_v1, %v333_v61  ;;  %v328_v4 = vadd.f32 %v578_v59, %v327_v2 }
 0x12f   :  { %637 = vmatmul.mubr.msk.bf16.vlgmr.msra.gmra.mxu0 %vm170_vm1, %v342_v56 }
 0x130   :  { %648 = vmatprep.mubr.msk.bf16.mxu0 %vm852_vm0, %v851_v0  ;;  %v345_v5 = vpack.c.bf16 %v328_v4, %v325_v63  ;;  %647 = vmatpush3.bf16.msra.mxu0 %v346_v3 }
 0x131   :  { %631 = vmatmul.mubr.msk.bf16.vlgmr.msra.gmra.mxu1 %vm170_vm1, %v341_v57 }
 0x132   :  { %642 = vmatprep.mubr.msk.bf16.mxu1 %vm852_vm0, %v851_v0  ;;  %641 = vmatpush3.bf16.msra.mxu1 %v345_v5 }
 0x1ef   :  { %v434_v7 = vpop.f32.mrf.mxu0 }
 0x1f0   :  { %v435_v12 = vadd.f32 %v434_v7, %v347_v6 }
 0x1f1   :  { %v388_v8 = vpop.f32.mrf.mxu1  ;;  %v638_v0 = vpop.f32.mrf.mxu0 }
 0x1f2   :  { %v389_v9 = vadd.f32 %v388_v8, %v347_v6  ;;  %v444_v17 = vsel %vm440_vm2, %v435_v12, -inf }
 0x1f3   :  { %v632_v10 = vpop.f32.mrf.mxu1  ;;  %v437_v11 = vpop.f32.mrf.mxu0 }
 0x1f4   :  { %v441_v13 = vsel %vm440_vm2, %v389_v9, -inf }
 0x1f5   :  { %442 = vmax.xlane.f32.xlu0 %v441_v13  ;;  %v391_v14 = vpop.f32.mrf.mxu1  ;;  %v639_v15 = vpop.f32.mrf.mxu0 }
 0x1f7   :  { %v633_v16 = vpop.f32.mrf.mxu1 }
 0x1f9   :  { %445 = vmax.xlane.f32.xlu0 %v444_v17 }
 0x27e   :  { %v443_v18 = vpop.xlane.xlu0 %442 }
 0x27f   :  { %v447_v19 = vsub.f32 %v389_v9, %v443_v18 }
 0x281   :  { %v449_v20 = vmul.f32 1.442695, %v447_v19 }
 0x282   :  { %v446_v21 = vpop.xlane.xlu0 %445 }
 0x283   :  { %664 = vpow2.f32 %v449_v20  ;;  %v448_v22 = vsub.f32 %v435_v12, %v446_v21 }
 0x285   :  { %v451_v23 = vmul.f32 1.442695, %v448_v22 }
 0x287   :  { %666 = vpow2.f32 %v451_v23 }
 0x290   :  { %v665_v24 = vpop.eup %664 }
 0x291   :  { %v453_v25 = vsel %vm440_vm2, %v665_v24, 0.0 }
 0x292   :  { %454 = vadd.xlane.f32.xlu1 %v453_v25 }
 0x294   :  { %v667_v26 = vpop.eup %666 }
 0x295   :  { %v456_v27 = vsel %vm440_vm2, %v667_v26, 0.0 }
 0x296   :  { %457 = vadd.xlane.f32.xlu1 %v456_v27 }
 0x31b   :  { %v455_v28 = vpop.xlane.xlu1 %454 }
 0x31c   :  { %668 = vrcp.f32 %v455_v28 }
 0x31f   :  { %v458_v29 = vpop.xlane.xlu1 %457 }
 0x320   :  { %670 = vrcp.f32 %v458_v29 }
 0x329   :  { %v669_v30 = vpop.eup %668 }
 0x32a   :  { %v461_v31 = vmul.f32 %v669_v30, %v665_v24 }
 0x32c   :  { %v463_v32 = vpack.c.bf16 %v461_v31, %v461_v31 }
 0x32d   :  { %v671_v33 = vpop.eup %670 }
 0x32e   :  { %643 = vmatmul.mubr.msk.bf16.vlgmr.msra.gmra.mxu1 %vm440_vm2, %v463_v32  ;;  %v462_v34 = vmul.f32 %v671_v33, %v667_v26 }
 0x330   :  { %v464_v35 = vpack.c.bf16 %v462_v34, %v462_v34 }
 0x332   :  { %649 = vmatmul.mubr.msk.bf16.vlgmr.msra.gmra.mxu0 %vm440_vm2, %v464_v35 }
 0x3ee   :  { %v502_v36 = vpop.f32.mrf.mxu1 }
 0x3ef   :  { %551 = vst.msk [vmem:[#allocation14] sm:$0xff] %vm170_vm1, %v502_v36 }
 0x3f0   :  { %v644_v37 = vpop.f32.mrf.mxu1 }
 0x3f2   :  { %v505_v38 = vpop.f32.mrf.mxu1  ;;  %v545_v39 = vpop.f32.mrf.mxu0 }
 0x3f3   :  { %552 = vst.msk [vmem:[#allocation14 + $0x8] sm:$0xff] %vm170_vm1, %v545_v39 }
 0x3f4   :  { %v645_v40 = vpop.f32.mrf.mxu1  ;;  %v650_v41 = vpop.f32.mrf.mxu0 }
 0x3f5   :  { %823 = shalt.err (!%p820_p11)
}
 0x3f6   :  { %564 = dma.vmem_to_hbm [thread:$0]  %s559_s29, 256, %s1006_s10, [#allocation4], %s844_s18, %s844_s18, %s845_s19   ;;  %v548_v42 = vpop.f32.mrf.mxu0 }
 0x3f8   :  { %v651_v43 = vpop.f32.mrf.mxu0 }
 0x3f9   :  { %840 = dma.done.wait [#allocation4], 256  }
 0x3fa   :  { %841 = vsyncadd [#allocation4], 4294967040 }
 0x3fb   :  { %568 = vsyncpa [#allocation3], 1 }
 0x3fc   :  { %569 = vsyncpa [#allocation6], 1 }
 0x3fd   :  { %570 = vsyncpa [#allocation9], 1 }
 0x3fe   :  { %571 = vsyncpa [#allocation12], 1 }
 0x3ff   :  { %572 = vsyncpa [#allocation4], 1 }

</bundles_post_ra>
